<compile_context>
chip_gen: v7x
topology: tpu7x:2x2x1
jax: 0.10.0
libtpu: 0.0.40
codegen_flags: <defaults>
</compile_context>

<pallas_src>
import functools
import math

import jax
import jax.numpy as jnp
from jax import lax
from jax.experimental import pallas as pl
from jax.experimental.pallas import tpu as pltpu


def _self_attention_kernel(x_ref, w_ref, b_ref, o_ref, k_scratch, v_scratch,
                           *, dim, tq, tk, nk, nqg):
    """One (batch, group, q-tile) grid step.

    x_ref     : (1, S, Dp)   bf16  full sequence (resident; Q rows sliced from it)
    w_ref     : (Dp, 3*Dp)   bf16  [Wq^T | Wk^T | Wv^T], zero-padded to Dp
    b_ref     : (1, 3*Dp)    f32   [bq | bk | bv], zero-padded
    o_ref     : (1, TQ, Dp)  f32
    k_scratch : (S, Dp)      bf16  VMEM, persists across q-tiles
    v_scratch : (S, Dp)      bf16  VMEM, persists across q-tiles
    """
    dp = w_ref.shape[0]
    g = pl.program_id(1)
    qi = pl.program_id(2)

    # ---- K/V projection: once per (batch, group), reused across query tiles. ----
    @pl.when(qi == 0)
    def _():
        x_full = x_ref[0]                                             # (S, Dp) bf16
        k = jnp.dot(x_full, w_ref[:, dp:2 * dp],
                    preferred_element_type=jnp.float32) + b_ref[:, dp:2 * dp]
        k_scratch[...] = k.astype(jnp.bfloat16)
        v = jnp.dot(x_full, w_ref[:, 2 * dp:],
                    preferred_element_type=jnp.float32) + b_ref[:, 2 * dp:]
        v_scratch[...] = v.astype(jnp.bfloat16)

    # ---- Q projection for this tile only (rows sliced from the resident x block). ----
    tile = g * nqg + qi
    q_off = pl.multiple_of(tile * tq, tq)
    x_q = x_ref[0, pl.ds(q_off, tq), :]                               # (tq, Dp) bf16
    q = jnp.dot(x_q, w_ref[:, :dp],
                preferred_element_type=jnp.float32) + b_ref[:, :dp]
    # Scale Q once before QK^T: O(TQ*D) instead of O(TQ*S).
    scale = 1.0 / math.sqrt(float(dim))
    q_b = (q * scale).astype(jnp.bfloat16)

    # Contract last dims of Q and K directly -> no explicit XLU transpose of K.
    dims = (((1,), (1,)), ((), ()))

    if nk == 1:
        # Whole-sequence path (small S): single score tile + stable softmax.
        scores = lax.dot_general(q_b, k_scratch[...], dims,
                                 preferred_element_type=jnp.float32)  # (tq, S)
        scores = scores - jnp.max(scores, axis=-1, keepdims=True)
        p = jnp.exp(scores)
        l = jnp.sum(p, axis=-1, keepdims=True)                        # (tq, 1)
        attended = jnp.dot(p.astype(jnp.bfloat16), v_scratch[...],
                           preferred_element_type=jnp.float32)        # (tq, Dp)
    else:
        # Online-softmax streaming over TK-sized K/V blocks: live set O(tq*tk + tq*Dp).
        def body(kb, carry):
            m, l, acc = carry
            k_off = pl.multiple_of(kb * tk, tk)
            k_blk = k_scratch[pl.ds(k_off, tk), :]
            v_blk = v_scratch[pl.ds(k_off, tk), :]
            s = lax.dot_general(q_b, k_blk, dims,
                                preferred_element_type=jnp.float32)   # (tq, tk)
            m_new = jnp.maximum(m, jnp.max(s, axis=-1, keepdims=True))
            alpha = jnp.exp(m - m_new)
            p = jnp.exp(s - m_new)
            l = alpha * l + jnp.sum(p, axis=-1, keepdims=True)
            acc = alpha * acc + jnp.dot(p.astype(jnp.bfloat16), v_blk,
                                        preferred_element_type=jnp.float32)
            return m_new, l, acc

        m0 = jnp.full((tq, 1), -jnp.inf, jnp.float32)
        l0 = jnp.zeros((tq, 1), jnp.float32)
        a0 = jnp.zeros((tq, dp), jnp.float32)
        _, l, attended = lax.fori_loop(0, nk, body, (m0, l0, a0))

    # Normalize after P@V: O(TQ*D); reciprocal goes to the EUP slot.
    # (approx=True ok at ~1e-3 relative error; use approx=False for tight tolerances.)
    attended = attended * pl.reciprocal(l, approx=True)
    o_ref[0] = attended.astype(o_ref.dtype)


def self_attention(x, wq, bq, wk, bk, wv, bv, *, tq_max=None, tk_max=512):
    """x: (B, S, D) f32; w*: (D, D) PyTorch-layout (out, in) Linear weights; b*: (D,)."""
    B, S, D = x.shape

    # Lane-dense feature dim: pad D up to a multiple of 128 (pads are exact zeros).
    Dp = -(-D // 128) * 128

    # Generation-aware sizing (v7x: 64 MiB VMEM/TC; v5e/v6e: 128 MiB).
    try:
        vmem_phys = int(pltpu.get_tpu_info().vmem_capacity_bytes)
    except Exception:
        vmem_phys = 64 * 1024 * 1024
    vmem_cap = int(vmem_phys * 0.8)
    if tq_max is None:
        tq_max = 256 if vmem_phys <= 64 * 1024 * 1024 else 512

    def pad_w(w):  # (out, in) -> transposed (in, out), zero-padded to (Dp, Dp)
        return jnp.pad(w.T, ((0, Dp - D), (0, Dp - D)))

    def pad_b(bias):
        return jnp.pad(bias, (0, Dp - D))

    # Fuse Q|K|V weights and biases into a single operand; bf16 for the MXU.
    w_qkv = jnp.concatenate([pad_w(wq), pad_w(wk), pad_w(wv)], axis=1).astype(jnp.bfloat16)
    b_qkv = jnp.concatenate([pad_b(bq), pad_b(bk), pad_b(bv)]).reshape(1, 3 * Dp)
    b_qkv = b_qkv.astype(jnp.float32)

    x_p = jnp.pad(x, ((0, 0), (0, 0), (0, Dp - D))).astype(jnp.bfloat16)

    # Query / key tiling (fall back to whole-S when it doesn't divide evenly).
    TQ = S if (S <= tq_max or S % tq_max != 0) else tq_max
    nq = S // TQ
    TK = S if (S <= tk_max or S % tk_max != 0) else tk_max
    nk = S // TK

    # Megacore split of the query tiles when there is no batch parallelism (v7x, B==1).
    G = 2 if (B == 1 and nq >= 2 and nq % 2 == 0) else 1
    NQG = nq // G

    # TODO(synk): for S*Dp too large for the K/V VMEM scratch, stream the K/V
    # projection from HBM in blocks instead of keeping it fully resident.

    # VMEM budget: pipelined blocks + K/V scratch + in-kernel live set, +40% headroom,
    # floored at 32 MiB and capped at ~80% of physical VMEM (headroom for the compiler).
    budget = (
        2 * S * Dp * 2            # x block, double-buffered bf16
        + Dp * 3 * Dp * 2         # fused weights, single-buffered bf16
        + 3 * Dp * 4              # fused biases, single-buffered f32
        + 2 * TQ * Dp * 4         # out block, double-buffered f32
        + 2 * S * Dp * 2          # K/V scratch bf16
        + S * Dp * 4              # f32 K or V before the bf16 cast (one at a time)
        + 3 * TQ * Dp * 4         # q / acc / attended f32
        + 2 * TQ * TK * 4         # scores + p f32
    )
    vmem_limit = int(min(vmem_cap, max(32 * 1024 * 1024, 1.4 * budget)))

    # Advisory cost estimate for XLA scheduling around the custom call.
    flops = int(
        2 * B * G * S * (2 * Dp) * Dp     # K/V projection, once per (batch, group)
        + 2 * B * S * Dp * Dp             # Q projection over all tiles
        + 2 * B * S * S * Dp              # Q @ K^T
        + 2 * B * S * S * Dp              # P @ V
    )
    cost = pl.CostEstimate(
        flops=flops,
        transcendentals=int(B * S * S),
        bytes_accessed=int(B * S * Dp * 2 + 3 * Dp * Dp * 2 + 3 * Dp * 4 + B * S * Dp * 4),
    )

    kernel = functools.partial(_self_attention_kernel,
                               dim=D, tq=TQ, tk=TK, nk=nk, nqg=NQG)

    out = pl.pallas_call(
        kernel,
        out_shape=jax.ShapeDtypeStruct((B, S, Dp), x.dtype),
        grid_spec=pltpu.PrefetchScalarGridSpec(
            num_scalar_prefetch=0,
            grid=(B, G, NQG),
            in_specs=[
                # Full-sequence x (only re-DMA'd when the batch index changes).
                pl.BlockSpec((1, S, Dp), lambda b, g, qi: (b, 0, 0)),
                # Constant weight/bias blocks: single-buffered (no pipelining benefit).
                pl.BlockSpec((Dp, 3 * Dp), lambda b, g, qi: (0, 0),
                             pipeline_mode=pl.Buffered(1)),
                pl.BlockSpec((1, 3 * Dp), lambda b, g, qi: (0, 0),
                             pipeline_mode=pl.Buffered(1)),
            ],
            out_specs=pl.BlockSpec((1, TQ, Dp),
                                   lambda b, g, qi: (b, g * NQG + qi, 0)),
            scratch_shapes=[
                pltpu.VMEM((S, Dp), jnp.bfloat16),   # K, reused across q-tiles
                pltpu.VMEM((S, Dp), jnp.bfloat16),   # V, reused across q-tiles
            ],
        ),
        compiler_params=pltpu.CompilerParams(
            dimension_semantics=("parallel", "parallel", "arbitrary"),
            vmem_limit_bytes=vmem_limit,
        ),
        cost_estimate=cost,
    )(x_p, w_qkv, b_qkv)

    return out[..., :D] if Dp != D else out


def _reference(x, wq, bq, wk, bk, wv, bv):
    q = jnp.einsum("bsd,ed->bse", x, wq) + bq
    k = jnp.einsum("bsd,ed->bse", x, wk) + bk
    v = jnp.einsum("bsd,ed->bse", x, wv) + bv
    scores = jnp.einsum("bqd,bkd->bqk", q, k) / math.sqrt(x.shape[-1])
    attn = jax.nn.softmax(scores, axis=-1)
    return jnp.einsum("bqk,bkd->bqd", attn, v)


if __name__ == "__main__":
    key = jax.random.PRNGKey(0)
    B, S, D = 2, 8, 32

    kx, kwq, kbq, kwk, kbk, kwv, kbv = jax.random.split(key, 7)
    x = jax.random.normal(kx, (B, S, D), dtype=jnp.float32)

    # Deterministic init mimicking nn.Linear's uniform(-1/sqrt(D), 1/sqrt(D)).
    bound = 1.0 / math.sqrt(D)
    wq = jax.random.uniform(kwq, (D, D), jnp.float32, -bound, bound)
    bq = jax.random.uniform(kbq, (D,), jnp.float32, -bound, bound)
    wk = jax.random.uniform(kwk, (D, D), jnp.float32, -bound, bound)
    bk = jax.random.uniform(kbk, (D,), jnp.float32, -bound, bound)
    wv = jax.random.uniform(kwv, (D, D), jnp.float32, -bound, bound)
    bv = jax.random.uniform(kbv, (D,), jnp.float32, -bound, bound)

    out = self_attention(x, wq, bq, wk, bk, wv, bv)
    out = jax.block_until_ready(out)

    ref = _reference(x, wq, bq, wk, bk, wv, bv)
    assert out.shape == (B, S, D)
    # bf16 MXU operands with f32 accumulation -> ~1e-2 level agreement vs f32 reference.
    assert jnp.allclose(out, ref, atol=5e-2, rtol=5e-2), \
        f"max abs err {jnp.max(jnp.abs(out - ref))}"

    print("KERNEL_OK")
</pallas_src>

<mosaic_0001>
module attributes {stable_mosaic.version = 11 : i64} {
  func.func @_self_attention_kernel(%arg0: i32, %arg1: i32, %arg2: i32, %arg3: memref<1x8x128xbf16, #tpu.memory_space<vmem>>, %arg4: memref<128x384xbf16, #tpu.memory_space<vmem>>, %arg5: memref<1x384xf32, #tpu.memory_space<vmem>>, %arg6: memref<1x8x128xf32, #tpu.memory_space<vmem>>, %arg7: memref<8x128xbf16, #tpu.memory_space<vmem>>, %arg8: memref<8x128xbf16, #tpu.memory_space<vmem>>) attributes {dimension_semantics = [#tpu.dimension_semantics<parallel>, #tpu.dimension_semantics<parallel>, #tpu.dimension_semantics<arbitrary>], iteration_bounds = array<i64: 2, 1, 1>, scalar_prefetch = 0 : i64, scratch_operands = 2 : i64, tpu.core_type = #tpu.core_type<tc>, window_params = [{transform_indices = @transform_0, window_bounds = array<i64: 1, 8, 128>}, {pipeline_mode = #tpu.pipeline_mode<synchronous>, transform_indices = @transform_1, window_bounds = array<i64: 128, 384>}, {pipeline_mode = #tpu.pipeline_mode<synchronous>, transform_indices = @transform_2, window_bounds = array<i64: 1, 384>}, {transform_indices = @transform_3, window_bounds = array<i64: 1, 8, 128>}]} {
    %c0_i32 = arith.constant 0 : i32
    %0 = arith.cmpi eq, %arg2, %c0_i32 : i32
    %1 = arith.extui %0 : i1 to i32
    %c0_i32_0 = arith.constant 0 : i32
    %2 = arith.cmpi ne, %1, %c0_i32_0 : i32
    scf.if %2 {
      %c0_18 = arith.constant 0 : index
      %c0_19 = arith.constant 0 : index
      %c0_20 = arith.constant 0 : index
      %36 = vector.load %arg3[%c0_18, %c0_19, %c0_20] : memref<1x8x128xbf16, #tpu.memory_space<vmem>>, vector<1x8x128xbf16>
      %37 = vector.shape_cast %36 : vector<1x8x128xbf16> to vector<8x128xbf16>
      %c0_21 = arith.constant 0 : index
      %c128 = arith.constant 128 : index
      %38 = vector.load %arg4[%c0_21, %c128] : memref<128x384xbf16, #tpu.memory_space<vmem>>, vector<128x128xbf16>
      %cst_22 = arith.constant dense<0.000000e+00> : vector<8x128xf32>
      %39 = tpu.matmul %37, %38, %cst_22 {dimension_numbers = #tpu.dot_dimension_numbers<[1], [0], [0], [1], [0, 0, 1, 1], [], []>} : vector<8x128xbf16>, vector<128x128xbf16>, vector<8x128xf32> -> vector<8x128xf32>
      %c0_23 = arith.constant 0 : index
      %c128_24 = arith.constant 128 : index
      %40 = vector.load %arg5[%c0_23, %c128_24] : memref<1x384xf32, #tpu.memory_space<vmem>>, vector<1x128xf32>
      %41 = vector.broadcast %40 : vector<1x128xf32> to vector<8x128xf32>
      %42 = arith.addf %39, %41 : vector<8x128xf32>
      %43 = arith.truncf %42 : vector<8x128xf32> to vector<8x128xbf16>
      %c0_25 = arith.constant 0 : index
      %c0_26 = arith.constant 0 : index
      %44 = vector.load %arg7[%c0_25, %c0_26] : memref<8x128xbf16, #tpu.memory_space<vmem>>, vector<8x128xbf16>
      tpu.vector_store %arg7[%c0_25, %c0_26], %43 {strides = array<i32>} : memref<8x128xbf16, #tpu.memory_space<vmem>>, vector<8x128xbf16>,
      %c0_27 = arith.constant 0 : index
      %c256 = arith.constant 256 : index
      %45 = vector.load %arg4[%c0_27, %c256] : memref<128x384xbf16, #tpu.memory_space<vmem>>, vector<128x128xbf16>
      %cst_28 = arith.constant dense<0.000000e+00> : vector<8x128xf32>
      %46 = tpu.matmul %37, %45, %cst_28 {dimension_numbers = #tpu.dot_dimension_numbers<[1], [0], [0], [1], [0, 0, 1, 1], [], []>} : vector<8x128xbf16>, vector<128x128xbf16>, vector<8x128xf32> -> vector<8x128xf32>
      %c0_29 = arith.constant 0 : index
      %c256_30 = arith.constant 256 : index
      %47 = vector.load %arg5[%c0_29, %c256_30] : memref<1x384xf32, #tpu.memory_space<vmem>>, vector<1x128xf32>
      %48 = vector.broadcast %47 : vector<1x128xf32> to vector<8x128xf32>
      %49 = arith.addf %46, %48 : vector<8x128xf32>
      %50 = arith.truncf %49 : vector<8x128xf32> to vector<8x128xbf16>
      %c0_31 = arith.constant 0 : index
      %c0_32 = arith.constant 0 : index
      %51 = vector.load %arg8[%c0_31, %c0_32] : memref<8x128xbf16, #tpu.memory_space<vmem>>, vector<8x128xbf16>
      tpu.vector_store %arg8[%c0_31, %c0_32], %50 {strides = array<i32>} : memref<8x128xbf16, #tpu.memory_space<vmem>>, vector<8x128xbf16>,
    } else {
    }
    %c1_i32 = arith.constant 1 : i32
    %3 = arith.muli %arg1, %c1_i32 : i32
    %4 = arith.addi %3, %arg2 : i32
    %c8_i32 = arith.constant 8 : i32
    %5 = arith.muli %4, %c8_i32 : i32
    %6 = tpu.assume_multiple %5, 8 : i32
    %c0 = arith.constant 0 : index
    %7 = arith.index_cast %6 : i32 to index
    %c0_1 = arith.constant 0 : index
    %8 = vector.load %arg3[%c0, %7, %c0_1] : memref<1x8x128xbf16, #tpu.memory_space<vmem>>, vector<1x8x128xbf16>
    %9 = vector.shape_cast %8 : vector<1x8x128xbf16> to vector<8x128xbf16>
    %c0_2 = arith.constant 0 : index
    %c0_3 = arith.constant 0 : index
    %10 = vector.load %arg4[%c0_2, %c0_3] : memref<128x384xbf16, #tpu.memory_space<vmem>>, vector<128x128xbf16>
    %cst = arith.constant dense<0.000000e+00> : vector<8x128xf32>
    %11 = tpu.matmul %9, %10, %cst {dimension_numbers = #tpu.dot_dimension_numbers<[1], [0], [0], [1], [0, 0, 1, 1], [], []>} : vector<8x128xbf16>, vector<128x128xbf16>, vector<8x128xf32> -> vector<8x128xf32>
    %c0_4 = arith.constant 0 : index
    %c0_5 = arith.constant 0 : index
    %12 = vector.load %arg5[%c0_4, %c0_5] : memref<1x384xf32, #tpu.memory_space<vmem>>, vector<1x128xf32>
    %13 = vector.broadcast %12 : vector<1x128xf32> to vector<8x128xf32>
    %14 = arith.addf %11, %13 : vector<8x128xf32>
    %cst_6 = arith.constant 0.176776692 : f32
    %15 = vector.broadcast %cst_6 : f32 to vector<8x128xf32>
    %16 = arith.mulf %14, %15 : vector<8x128xf32>
    %17 = arith.truncf %16 : vector<8x128xf32> to vector<8x128xbf16>
    %c0_7 = arith.constant 0 : index
    %c0_8 = arith.constant 0 : index
    %18 = vector.load %arg7[%c0_7, %c0_8] : memref<8x128xbf16, #tpu.memory_space<vmem>>, vector<8x128xbf16>
    %cst_9 = arith.constant dense<0.000000e+00> : vector<8x8xf32>
    %19 = tpu.matmul %17, %18, %cst_9 {dimension_numbers = #tpu.dot_dimension_numbers<[1], [1], [0], [0], [0, 0, 1, 0], [], []>} : vector<8x128xbf16>, vector<8x128xbf16>, vector<8x8xf32> -> vector<8x8xf32>
    %cst_10 = arith.constant dense<0xFF800000> : vector<8xf32>
    %20 = vector.multi_reduction <maximumf>, %19, %cst_10 [1] : vector<8x8xf32> to vector<8xf32>
    %21 = vector.shape_cast %20 : vector<8xf32> to vector<8x1xf32>
    %22 = vector.broadcast %21 : vector<8x1xf32> to vector<8x8xf32>
    %23 = arith.subf %19, %22 : vector<8x8xf32>
    %24 = math.exp %23 : vector<8x8xf32>
    %cst_11 = arith.constant dense<0.000000e+00> : vector<8xf32>
    %25 = vector.multi_reduction <add>, %24, %cst_11 [1] : vector<8x8xf32> to vector<8xf32>
    %26 = vector.shape_cast %25 : vector<8xf32> to vector<8x1xf32>
    %27 = arith.truncf %24 : vector<8x8xf32> to vector<8x8xbf16>
    %c0_12 = arith.constant 0 : index
    %c0_13 = arith.constant 0 : index
    %28 = vector.load %arg8[%c0_12, %c0_13] : memref<8x128xbf16, #tpu.memory_space<vmem>>, vector<8x128xbf16>
    %cst_14 = arith.constant dense<0.000000e+00> : vector<8x128xf32>
    %29 = tpu.matmul %27, %28, %cst_14 {dimension_numbers = #tpu.dot_dimension_numbers<[1], [0], [0], [1], [0, 0, 1, 1], [], []>} : vector<8x8xbf16>, vector<8x128xbf16>, vector<8x128xf32> -> vector<8x128xf32>
    %30 = tpu.reciprocal %26 {approx = true} : vector<8x1xf32> -> vector<8x1xf32>
    %31 = vector.broadcast %30 : vector<8x1xf32> to vector<8x128xf32>
    %32 = arith.mulf %29, %31 : vector<8x128xf32>
    %c0_15 = arith.constant 0 : index
    %c0_16 = arith.constant 0 : index
    %c0_17 = arith.constant 0 : index
    %33 = vector.load %arg6[%c0_15, %c0_16, %c0_17] : memref<1x8x128xf32, #tpu.memory_space<vmem>>, vector<1x8x128xf32>
    %34 = vector.shape_cast %33 : vector<1x8x128xf32> to vector<8x128xf32>
    %35 = vector.shape_cast %32 : vector<8x128xf32> to vector<1x8x128xf32>
    tpu.vector_store %arg6[%c0_15, %c0_16, %c0_17], %35 {strides = array<i32>} : memref<1x8x128xf32, #tpu.memory_space<vmem>>, vector<1x8x128xf32>,
    return
  }
  func.func @transform_0(%arg0: i32, %arg1: i32, %arg2: i32) -> (i32, i32, i32) {
    %c0_i32 = arith.constant 0 : i32
    %c0_i32_0 = arith.constant 0 : i32
    %c0_i32_1 = arith.constant 0 : i32
    return %arg0, %c0_i32, %c0_i32_0 : i32, i32, i32
  }
  func.func @transform_1(%arg0: i32, %arg1: i32, %arg2: i32) -> (i32, i32) {
    %c0_i32 = arith.constant 0 : i32
    %c0_i32_0 = arith.constant 0 : i32
    %c0_i32_1 = arith.constant 0 : i32
    return %c0_i32, %c0_i32_0 : i32, i32
  }
  func.func @transform_2(%arg0: i32, %arg1: i32, %arg2: i32) -> (i32, i32) {
    %c0_i32 = arith.constant 0 : i32
    %c0_i32_0 = arith.constant 0 : i32
    %c0_i32_1 = arith.constant 0 : i32
    return %c0_i32, %c0_i32_0 : i32, i32
  }
  func.func @transform_3(%arg0: i32, %arg1: i32, %arg2: i32) -> (i32, i32, i32) {
    %c1_i32 = arith.constant 1 : i32
    %0 = arith.muli %arg1, %c1_i32 : i32
    %1 = arith.addi %0, %arg2 : i32
    %c0_i32 = arith.constant 0 : i32
    %c0_i32_0 = arith.constant 0 : i32
    return %arg0, %1, %c0_i32 : i32, i32, i32
  }
}

</mosaic_0001>

<bundles_post_ra>
// kernel: tpu_custom_call.1
= control target key start
LH: loop header
LB: loop body
LE: loop exit
PB: predicated region body
PF: predicated region fallthrough
CT: control target
= control target key end

     0   :  { %8 = vsyncpa [#allocation5], 0  ;;  %s1479_s0 = inlined_call_operand.hbm [shape: bf16[2,8,128], index: 0, kind: input, shape index: {}]   ;;  %s1480_s1 = inlined_call_operand.hbm [shape: bf16[128,384], index: 1, kind: input, shape index: {}]   ;;  %s1481_s2 = inlined_call_operand.vmem [shape: f32[1,384], index: 2, kind: input, shape index: {}]   ;;  %s1482_s3 = inlined_call_operand.hbm [shape: f32[2,8,128], index: 3, kind: output, shape index: {}]  }
   0x1   :  { %10 = vsyncpa [#allocation5 + $0x1], 0 }
   0x2   :  { %11 = vsyncpa [#allocation8], 0 }
   0x3   :  { %12 = vsyncpa [#allocation6], 0 }
   0x4   :  { %14 = vsyncpa [#allocation6 + $0x1], 0  ;;  %s1215_s12 = smov 0   ;;  %s1217_s13 = smov 0  }
   0x5   :  { %s1219_s14 = smov 0   ;;  %s1221_s15 = smov 0  }
   0x6   :  { %s1223_s16 = smov 0   ;;  %s1225_s17 = smov 0  }
   0x7 LB: > { %s791_s18 = sadd.s32 4294967295, %s1186_s17   ;;  %s792_s19 = sadd.s32 4294967294, %s1186_s17   ;;  %s1186_s17 = sphi %s1225_s17, %s20_s17   ;;  %s1182_s16 = sphi %s1223_s16, %s1506_s16   ;;  %s1178_s15 = sphi %s1221_s15, %s1505_s15   ;;  %s1174_s14 = sphi %s1219_s14, %s1504_s14   ;;  %s1170_s13 = sphi %s1217_s13, %s1503_s13   ;;  %s1166_s12 = sphi %s1215_s12, %s1502_s12  }
   0x8   : > { %p59_p0 = scmp.ne.s32.totalorder %s1170_s13, %s1166_s12  ;;  %p1249_p1 = scmp.eq.s32.totalorder %s791_s18, 0 }
   0x9   : > { %p1253_p2 = scmp.eq.s32.totalorder %s791_s18, 1  ;;  %p135_p3 = scmp.eq.s32.totalorder %s792_s19, 1 }
   0xa   : > { %s1487_s20 = scalar_select %p1249_p1, 1, 0 }
   0xb   : > { %s1488_s21 = scalar_select %p1253_p2, 1, 0 }
   0xc   : > { %p1259_p4 = por %p1249_p1, %p59_p0  ;;  %p793_p5 = scmp.ge.s32.totalorder %s1186_s17, 1 }
   0xd   : > { %p1264_p6 = por %p135_p3, %p59_p0  ;;  %p142_p7 = scmp.lt.s32.totalorder %s1186_s17, 3 }
   0xe   : > { %s1489_s22 = scalar_select %p1259_p4, 1, 0 }
   0xf   : > { %s1490_s23 = scalar_select %p1264_p6, 1, 0 }
  0x10   : > { %p1269_p8 = pnand %p793_p5, %p142_p7  ;;  %s1188_s25 = smov [#allocation7]  }
  0x11   : > { %s154_s26 = sshll.u32 %s1188_s25, 4  ;;  %s39_s28 = sadd.s32 1, %s1182_s16  ;;  %s155_s26 = int_to_ptr.vmem [resolvable:$true] %s154_s26 }
  0x12   : > { %s1491_s24 = scalar_select %p1269_p8, 1, 0 }
  0x13   : > { %p945_p9 = pneg %p1269_p8  ;;  %s1042_s4 = scalar_lea.hbm %s1480_s1, 3072 }
  0x14   : > { %p1043_p12 = scmp.ne.s32.totalorder %s1480_s1, %s1042_s4  ;;  %p1049_p5 = scmp.lt.u32.totalorder %s1042_s4, %s1480_s1 }
  0x15   : > { %p1278_p11 = pnand %p945_p9, %p1249_p1 }
  0x17   : > { %p1044_p13 = pneg %p1278_p11 }
  0x19   : > { %p1045_p0 = pnand %p1044_p13, %p1043_p12 }
  0x1b   : > { %p1046_p3 = pneg %p1045_p0 }
  0x1d   : > { %p1051_p7 = pnand %p1049_p5, %p1046_p3 }
  0x1f   : > { %1054 = shalt.err (!%p1051_p7)
}
  0x20   : > { %s1055_s9 = scalar_lea.vmem %s155_s26, 3072  ;;  %p1063_p1 = scmp.lt.s32.totalorder %s155_s26, %s155_s26 }
  0x21   : > { %p1056_p9 = scmp.ne.s32.totalorder %s155_s26, %s1055_s9  ;;  %p1064_p4 = scmp.lt.s32.totalorder %s1055_s9, %s1055_s9 }
  0x23   : > { %p1058_p10 = pnand %p1056_p9, %p1044_p13  ;;  %p1065_p8 = por %p1064_p4, %p1063_p1 }
  0x25   : > { %p1059_p6 = pneg %p1058_p10 }
  0x27   : > { %p1066_p2 = pnand %p1065_p8, %p1059_p6 }
  0x29   : > { %1069 = shalt.err (!%p1066_p2)
}
  0x2a   : > { %s1189_s10 = smov 192   ;;  %s1190_s11 = smov 12  }
  0x2b   : > { %948 = dma.hbm_to_vmem [thread:$0]  (!%p1278_p11), %s1480_s1, 3072, %s155_s26, [#allocation8], %s1189_s10, %s1189_s10, %s1190_s11  }
  0x2c   : > { %p41_p1 = scmp.ge.s32.totalorder %s39_s28, 2  ;;  %s46_s25 = sadd.s32 1, %s1174_s14 }
  0x2d   : > { %p53_p2 = scmp.ne.s32.totalorder %s1174_s14, %s1170_s13  ;;  %p54_p4 = scmp.eq.s32.totalorder %s1186_s17, 0 }
  0x2e   : > { %s1508_s28 = smov (%p41_p1, %s39_s28), 0  ;;  %p1494_p8 = scmp.ne.s32.totalorder %s1488_s21, 0 }
  0x2f   : > { %p1305_p6 = por %p54_p4, %p53_p2  ;;  %s43_s27 = ssub.s32 %s1182_s16, %s1508_s28 }
  0x30   : > { %p1311_p10 = por %p1494_p8, %p53_p2  ;;  %p958_p12 = scmp.lt.s32.totalorder %s1186_s17, 2 }
  0x31   : > { %p44_p11 = scmp.eq.s32.totalorder %s43_s27, 0  ;;  %s171_s26 = sand.u32 1, %s1174_s14  }
  0x32   : > { %s796_s4 = sshll.u32 %s171_s26, 2  ;;  %s797_s6 = sshll.u32 %s1182_s16, 6 }
  0x33   : > { %s1320_s5 = scalar_select %p44_p11, %s1174_s14, %s46_s25  }
  0x34   : > { %s1326_s9 = scalar_lea.hbm %s1479_s0, %s797_s6  ;;  %s175_s21 = scalar_lea.vmem [#allocation4], %s796_s4 }
  0x35   : > { %s182_s10 = sshll.u32 %s175_s21, 4  ;;  %p1332_p13 = pnand %p958_p12, %p1305_p6  ;;  %s1328_s10 = int_to_ptr.vmem [resolvable:$true] %s182_s10 }
  0x36   : > { %s172_s18 = scalar_lea.sflag [#allocation5], %s171_s26  ;;  %s1070_s19 = scalar_lea.hbm %s1326_s9, 64 }
  0x37   : > { %p1071_p0 = scmp.ne.s32.totalorder %s1326_s9, %s1070_s19  ;;  %p1072_p3 = pneg %p1332_p13 }
  0x38   : > { %s1075_s4 = scalar_lea.hbm %s1479_s0, 128  ;;  %p1076_p9 = scmp.lt.u32.totalorder %s1326_s9, %s1479_s0 }
  0x39   : > { %p1073_p5 = pnand %p1072_p3, %p1071_p0  ;;  %p1077_p1 = scmp.lt.u32.totalorder %s1075_s4, %s1070_s19 }
  0x3a   : > { %p1079_p4 = scmp.lt.u32.totalorder %s1070_s19, %s1326_s9 }
  0x3b   : > { %p1074_p7 = pneg %p1073_p5  ;;  %p1078_p2 = por %p1077_p1, %p1076_p9 }
  0x3d   : > { %p1080_p6 = por %p1079_p4, %p1078_p2 }
  0x3f   : > { %p1081_p8 = pnand %p1080_p6, %p1074_p7 }
  0x41   : > { %1084 = shalt.err (!%p1081_p8)
}
  0x42   : > { %s1085_s26 = scalar_lea.vmem %s1328_s10, 64  ;;  %s1191_s7 = smov [#allocation4]  }
  0x43   : > { %p1086_p12 = scmp.ne.s32.totalorder %s1328_s10, %s1085_s26  ;;  %s1090_s8 = sshll.u32 %s1191_s7, 4  ;;  %s1091_s8 = int_to_ptr.vmem [resolvable:$false] %s1090_s8 }
  0x44   : > { %s1092_s21 = scalar_lea.vmem %s1091_s8, 128  ;;  %p1093_p5 = scmp.lt.s32.totalorder %s1328_s10, %s1091_s8 }
  0x45   : > { %p1088_p11 = pnand %p1086_p12, %p1072_p3  ;;  %p1094_p9 = scmp.lt.s32.totalorder %s1092_s21, %s1085_s26 }
  0x47   : > { %p1089_p0 = pneg %p1088_p11  ;;  %p1095_p1 = por %p1094_p9, %p1093_p5 }
  0x49   : > { %p1096_p2 = pnand %p1095_p1, %p1089_p0 }
  0x4b   : > { %1099 = shalt.err (!%p1096_p2)
}
  0x4c   : > { %952 = dma.hbm_to_vmem [thread:$0]  (!%p1332_p13), %s1326_s9, 64, %s1328_s10, %s172_s18  }
  0x4d   : > { %p1497_p7 = scmp.ne.s32.totalorder %s1491_s24, 0 }
  0x4e   : > { %s1364_s19 = sand.u32 (!%p1497_p7), 1, %s1170_s13   ;;  %p1498_p3 = scmp.ne.s32.totalorder (!%p1497_p7), %s1489_s22, 0 }
  0x4f   : > { %191 = sbr.rel (%p1497_p7) target bundleno = 974 (0x3ce), region = 32  ;;  %s799_s25 = sshll.u32 (!%p1497_p7), %s1364_s19, 2 }
  0x50   : > { %s194_s27 = scalar_lea.sflag (!%p1497_p7), [#allocation5], %s1364_s19  ;;  %s1368_s4 = scalar_lea.vmem (!%p1497_p7), [#allocation4], %s799_s25 }
  0x56   : > { %1153 = dma.done.wait (%p1498_p3), %s194_s27, 64  }
  0x57   : > { %1155 = vsyncadd (%p1498_p3), %s194_s27, 4294967232  ;;  %p1499_p13 = scmp.ne.s32.totalorder %s1487_s20, 0 }
  0x59   : > { %1157 = dma.done.wait (%p1499_p13), [#allocation8], 3072  }
  0x5a   : > { %1159 = vsyncadd (%p1499_p13), [#allocation8], 4294964224  ;;  %v1192_v0 = vmov 0.0   ;;  %vm1193_vm0 = vmmov 0   ;;  %v1014_v1 = vld [vmem:[#allocation7 + $0x4] ss:$12 sps:$4 sm:$0xff]  }
  0x5b   : > { %865 = vmatprep.subr.bf16.mxu0 %v1192_v0  ;;  %881 = vmatprep.mubr.msk.bf16.mxu0 %vm1193_vm0, %v1192_v0  ;;  %v1015_v2 = vld [vmem:[#allocation7 + $0x1c] ss:$12 sps:$4 sm:$0xff]   ;;  %v1016_v3 = vld [vmem:[#allocation7 + $0x34] ss:$12 sps:$4 sm:$0xff]   ;;  %v1017_v4 = vld [vmem:[#allocation7 + $0x4c] ss:$12 sps:$4 sm:$0xff]  }
  0x5c   : > { %885 = vmatprep.subr.bf16.mxu1 %v1192_v0  ;;  %901 = vmatprep.mubr.msk.bf16.mxu1 %vm1193_vm0, %v1192_v0  ;;  %v1018_v5 = vld [vmem:[#allocation7 + $0x64] ss:$12 sps:$4 sm:$0xff]   ;;  %v1030_v6 = vld [vmem:[#allocation7 + $0x8] ss:$12 sps:$4 sm:$0xff]   ;;  %v1031_v8 = vld [vmem:[#allocation7 + $0x20] ss:$12 sps:$4 sm:$0xff]  }
  0x5d   : > { %866 = vmatpush3.bf16.msra.mxu0 %v1014_v1  ;;  %v1019_v7 = vld [vmem:[#allocation7 + $0x7c] ss:$12 sps:$4 sm:$0xff]   ;;  %886 = vmatpush3.bf16.msra.mxu1 %v1030_v6  ;;  %v1020_v9 = vld [vmem:[#allocation7 + $0x94] ss:$12 sps:$4 sm:$0xff]   ;;  %v1032_v10 = vld [vmem:[#allocation7 + $0x38] ss:$12 sps:$4 sm:$0xff]  }
  0x5e   : > { %867 = vmatprep.subr.bf16.mxu0 %v1192_v0  ;;  %887 = vmatprep.subr.bf16.mxu1 %v1192_v0  ;;  %v1021_v11 = vld [vmem:[#allocation7 + $0xac] ss:$12 sps:$4 sm:$0xff]   ;;  %v1033_v12 = vld [vmem:[#allocation7 + $0x50] ss:$12 sps:$4 sm:$0xff]   ;;  %v1034_v15 = vld [vmem:[#allocation7 + $0x68] ss:$12 sps:$4 sm:$0xff]  }
  0x5f   : > { %v230_v13 = vld [vmem:[%s1368_s4] sm:$0xf]  ;;  %v1022_v14 = vld [vmem:[#allocation7] ss:$12 sps:$4 sm:$0xff]   ;;  %v1025_v19 = vld [vmem:[#allocation7 + $0x48] ss:$12 sps:$4 sm:$0xff]  }
  0x60   : > { %v1023_v16 = vld [vmem:[#allocation7 + $0x18] ss:$12 sps:$4 sm:$0xff]   ;;  %v1035_v17 = vld [vmem:[#allocation7 + $0x80] ss:$12 sps:$4 sm:$0xff]   ;;  %v1024_v18 = vld [vmem:[#allocation7 + $0x30] ss:$12 sps:$4 sm:$0xff]  }
  0x61   : > { %868 = vmatpush3.bf16.msra.mxu0 %v1015_v2  ;;  %888 = vmatpush3.bf16.msra.mxu1 %v1031_v8  ;;  %v1026_v20 = vld [vmem:[#allocation7 + $0x60] ss:$12 sps:$4 sm:$0xff]   ;;  %v1027_v21 = vld [vmem:[#allocation7 + $0x78] ss:$12 sps:$4 sm:$0xff]   ;;  %v1028_v22 = vld [vmem:[#allocation7 + $0x90] ss:$12 sps:$4 sm:$0xff]  }
  0x62   : > { %869 = vmatprep.subr.bf16.mxu0 %v1192_v0  ;;  %889 = vmatprep.subr.bf16.mxu1 %v1192_v0  ;;  %v1029_v23 = vld [vmem:[#allocation7 + $0xa8] ss:$12 sps:$4 sm:$0xff]   ;;  %v463_v24 = vld [vmem:[%s1368_s4] sm:$0xf]  ;;  %v802_v27 = vld [vmem:[%s1481_s2 + $0x1] ss:$0 sm:$0xff] }
  0x63   : > { %v1036_v25 = vld [vmem:[#allocation7 + $0x98] ss:$12 sps:$4 sm:$0xff]   ;;  %v1037_v26 = vld [vmem:[#allocation7 + $0xb0] ss:$12 sps:$4 sm:$0xff]   ;;  %vm633_vm1 = vcmask 1043456   ;;  %vm618_vm2 = vcmask 64512  }
  0x64   : > { %v820_v35 = vld [vmem:[%s1481_s2] ss:$0 sm:$0xff]  ;;  %v811_v43 = vld [vmem:[%s1481_s2 + $0x2] ss:$0 sm:$0xff]  ;;  %s801_s18 = sshll.u32 %s1364_s19, 3  ;;  %s831_s29 = sshll.u32 %s1178_s15, 7 }
  0x65   : > { %870 = vmatpush3.bf16.msra.mxu0 %v1016_v3  ;;  %890 = vmatpush3.bf16.msra.mxu1 %v1032_v10  ;;  %s223_s6 = scalar_lea.vmem [#allocation9], %s801_s18  ;;  %s1430_s21 = scalar_lea.hbm %s1482_s3, %s831_s29 }
  0x66   : > { %871 = vmatprep.subr.bf16.mxu0 %v1192_v0  ;;  %891 = vmatprep.subr.bf16.mxu1 %v1192_v0  ;;  %s696_s26 = sshll.u32 %s223_s6, 4  ;;  %s681_s15 = scalar_lea.sflag [#allocation6], %s1364_s19  ;;  %s1432_s26 = int_to_ptr.vmem [resolvable:$true] %s696_s26 }
  0x67   : > { %s1100_s25 = scalar_lea.vmem %s1432_s26, 128  ;;  %s1194_s27 = smov [#allocation9]  }
  0x68   : > { %p1101_p4 = scmp.ne.s32.totalorder %s1432_s26, %s1100_s25  ;;  %s1104_s4 = sshll.u32 %s1194_s27, 4  ;;  %s1105_s4 = int_to_ptr.vmem [resolvable:$false] %s1104_s4 }
  0x69   : > { %872 = vmatpush3.bf16.msra.mxu0 %v1017_v4  ;;  %892 = vmatpush3.bf16.msra.mxu1 %v1033_v12  ;;  %s1106_s20 = scalar_lea.vmem %s1105_s4, 256  ;;  %p1107_p12 = scmp.lt.s32.totalorder %s1432_s26, %s1105_s4 }
  0x6a   : > { %873 = vmatprep.subr.bf16.mxu0 %v1192_v0  ;;  %893 = vmatprep.subr.bf16.mxu1 %v1192_v0  ;;  %p1102_p6 = pnand %p1101_p4, %p1311_p10  ;;  %p1108_p11 = scmp.lt.s32.totalorder %s1106_s20, %s1100_s25 }
  0x6c   : > { %p1103_p8 = pneg %p1102_p6  ;;  %p1109_p0 = por %p1108_p11, %p1107_p12 }
  0x6d   : > { %874 = vmatpush3.bf16.msra.mxu0 %v1018_v5  ;;  %894 = vmatpush3.bf16.msra.mxu1 %v1034_v15 }
  0x6e   : > { %875 = vmatprep.subr.bf16.mxu0 %v1192_v0  ;;  %895 = vmatprep.subr.bf16.mxu1 %v1192_v0  ;;  %p1110_p5 = pnand %p1109_p0, %p1103_p8 }
  0x71   : > { %876 = vmatpush3.bf16.msra.mxu0 %v1019_v7  ;;  %896 = vmatpush3.bf16.msra.mxu1 %v1035_v17 }
  0x72   : > { %877 = vmatprep.subr.bf16.mxu0 %v1192_v0  ;;  %897 = vmatprep.subr.bf16.mxu1 %v1192_v0 }
  0x75   : > { %878 = vmatpush3.bf16.msra.mxu0 %v1020_v9  ;;  %898 = vmatpush3.bf16.msra.mxu1 %v1036_v25 }
  0x76   : > { %879 = vmatprep.subr.bf16.mxu0 %v1192_v0  ;;  %899 = vmatprep.subr.bf16.mxu1 %v1192_v0 }
  0x79   : > { %880 = vmatpush3.bf16.msra.mxu0 %v1021_v11  ;;  %900 = vmatpush3.bf16.msra.mxu1 %v1037_v26 }
  0x7a   : > { %905 = vmatprep.subr.bf16.mxu0 %v1192_v0  ;;  %925 = vmatprep.subr.bf16.mxu1 %v1192_v0 }
  0x7c   : > { %882 = vmatmul.mubr.bf16.vlgmr.msra.gmra.mrb[0].mxu0 %v230_v13  ;;  %902 = vmatmul.mubr.bf16.vlgmr.msra.gmra.mrb[0].mxu1 %v230_v13 }
  0x7d   : > { %906 = vmatpush3.bf16.msra.mxu0 %v1022_v14  ;;  %921 = vmatprep.mubr.msk.bf16.mxu0 %vm1193_vm0, %v1192_v0 }
  0x7e   : > { %907 = vmatprep.subr.bf16.mxu0 %v1192_v0  ;;  %927 = vmatprep.mubr.msk.bf16.mxu1 %vm1193_vm0, %v1192_v0 }
  0x81   : > { %908 = vmatpush3.bf16.msra.mxu0 %v1023_v16 }
  0x82   : > { %909 = vmatprep.subr.bf16.mxu0 %v1192_v0 }
  0x85   : > { %910 = vmatpush3.bf16.msra.mxu0 %v1024_v18 }
  0x86   : > { %911 = vmatprep.subr.bf16.mxu0 %v1192_v0 }
  0x89   : > { %912 = vmatpush3.bf16.msra.mxu0 %v1025_v19 }
  0x8a   : > { %913 = vmatprep.subr.bf16.mxu0 %v1192_v0 }
  0x8d   : > { %914 = vmatpush3.bf16.msra.mxu0 %v1026_v20 }
  0x8e   : > { %915 = vmatprep.subr.bf16.mxu0 %v1192_v0 }
  0x91   : > { %916 = vmatpush3.bf16.msra.mxu0 %v1027_v21 }
  0x92   : > { %917 = vmatprep.subr.bf16.mxu0 %v1192_v0 }
  0x95   : > { %918 = vmatpush3.bf16.msra.mxu0 %v1028_v22 }
  0x96   : > { %919 = vmatprep.subr.bf16.mxu0 %v1192_v0 }
  0x99   : > { %920 = vmatpush3.bf16.msra.mxu0 %v1029_v23 }
  0x9c   : > { %922 = vmatmul.mubr.bf16.vlgmr.msra.gmra.mrb[4].mxu0 %v463_v24 }
 0x14f   : > { %v336_v28 = vpop.f32.mrb[0].mxu0  ;;  %v449_v44 = vpop.f32.mrb[0].mxu1 }
 0x150   : > { %v337_v29 = vadd.f32 %v802_v27, %v336_v28  ;;  %v883_v30 = vpop.f32.mrb[1].mxu0  ;;  %v450_v45 = vadd.f32 %v811_v43, %v449_v44  ;;  %v903_v46 = vpop.f32.mrb[1].mxu1 }
 0x151   : > { %v339_v31 = vpop.f32.mrb[2].mxu0  ;;  %v452_v47 = vpop.f32.mrb[2].mxu1 }
 0x152   : > { %v342_v32 = vpack.c.bf16 %v337_v29, %v337_v29  ;;  %v884_v33 = vpop.f32.mrb[3].mxu0  ;;  %v455_v48 = vpack.c.bf16 %v450_v45, %v450_v45  ;;  %v904_v49 = vpop.f32.mrb[3].mxu1 }
 0x154   : > { %343 = vst [vmem:[#allocation2] sm:$0xf] %v342_v32  ;;  %456 = vst [vmem:[#allocation3] sm:$0xf] %v455_v48 }
 0x15b   : > { %v577_v34 = vld [vmem:[#allocation2] sm:$0xf]  ;;  %v629_v50 = vld [vmem:[#allocation3] sm:$0xf] }
 0x15c   : > { %926 = vmatpush3.bf16.xpose.msra.mxu1 %v577_v34  ;;  %v635_v51 = vsel %vm633_vm1, %v629_v50, 0 }
 0x15d   : > { %931 = vmatprep.subr.bf16.mxu1 %v1192_v0 }
 0x16f   : > { %v569_v36 = vpop.f32.mrb[4].mxu0 }
 0x170   : > { %v570_v37 = vadd.f32 %v820_v35, %v569_v36  ;;  %v923_v38 = vpop.f32.mrb[5].mxu0 }
 0x171   : > { %v572_v39 = vpop.f32.mrb[6].mxu0 }
 0x172   : > { %v575_v40 = vmul.f32 0.17677669, %v570_v37  ;;  %v924_v41 = vpop.f32.mrb[7].mxu0 }
 0x174   : > { %v576_v42 = vpack.c.bf16 %v575_v40, %v575_v40 }
 0x176   : > { %928 = vmatmul.mubr.bf16.vlgmr.msra.gmra.mrb[4].mxu1 %v576_v42 }
 0x177   : > { %933 = vmatprep.mubr.msk.bf16.mxu1 %vm1193_vm0, %v1192_v0  ;;  %932 = vmatpush3.bf16.msra.mxu1 %v635_v51 }
 0x249   : > { %v612_v52 = vpop.f32.mrb[4].mxu1 }
 0x24a   : > { %v929_v53 = vpop.f32.mrb[5].mxu1  ;;  %v619_v54 = vsel %vm618_vm2, %v612_v52, -inf }
 0x24b   : > { %620 = vmax.xlane.f32.xlu0 %v619_v54  ;;  %v615_v55 = vpop.f32.mrb[6].mxu1 }
 0x24c   : > { %v930_v56 = vpop.f32.mrb[7].mxu1 }
 0x2d8   : > { %v621_v57 = vpop.xlane.xlu0 %620 }
 0x2d9   : > { %v622_v58 = vsub.f32 %v612_v52, %v621_v57 }
 0x2db   : > { %v623_v59 = vmul.f32 1.442695, %v622_v58 }
 0x2dd   : > { %1038 = vpow2.f32 %v623_v59 }
 0x2e7   : > { %v1039_v60 = vpop.eup %1038 }
 0x2e8   : > { %v625_v61 = vsel %vm618_vm2, %v1039_v60, 0.0  ;;  %v628_v62 = vpack.c.bf16 %v1039_v60, %v1039_v60 }
 0x2e9   : > { %626 = vadd.xlane.f32.xlu0 %v625_v61 }
 0x2ea   : > { %934 = vmatmul.mubr.msk.bf16.vlgmr.msra.gmra.mrb[8].mxu1 %vm618_vm2, %v628_v62 }
 0x376   : > { %v627_v63 = vpop.xlane.xlu0 %626 }
 0x377   : > { %1040 = vrcp.f32 %v627_v63 }
 0x381   : > { %v1041_v0 = vpop.eup %1040 }
 0x3bd   : > { %v671_v1 = vpop.f32.mrb[8].mxu1 }
 0x3be   : > { %v678_v2 = vmul.f32 %v1041_v0, %v671_v1  ;;  %v935_v3 = vpop.f32.mrb[9].mxu1 }
 0x3bf   : > { %v674_v4 = vpop.f32.mrb[10].mxu1 }
 0x3c0   : > { %679 = vst [vmem:[%s223_s6] sm:$0xff] %v678_v2  ;;  %v936_v5 = vpop.f32.mrb[11].mxu1 }
 0x3c1   : > { %1113 = shalt.err (!%p1110_p5)
}
 0x3c2   : > { %s1114_s19 = scalar_lea.hbm %s1430_s21, 128  ;;  %s1118_s9 = scalar_lea.hbm %s1482_s3, 256 }
 0x3c3   : > { %p1115_p9 = scmp.ne.s32.totalorder %s1430_s21, %s1114_s19  ;;  %p1119_p7 = scmp.lt.u32.totalorder %s1430_s21, %s1482_s3 }
 0x3c4   : > { %p1120_p3 = scmp.lt.u32.totalorder %s1118_s9, %s1114_s19  ;;  %p1122_p4 = scmp.lt.u32.totalorder %s1114_s19, %s1430_s21 }
 0x3c5   : > { %p1116_p1 = pnand %p1115_p9, %p1311_p10 }
 0x3c6   : > { %p1121_p13 = por %p1120_p3, %p1119_p7 }
 0x3c7   : > { %p1117_p2 = pneg %p1116_p1 }
 0x3c8   : > { %p1123_p6 = por %p1122_p4, %p1121_p13 }
 0x3ca   : > { %p1124_p8 = pnand %p1123_p6, %p1117_p2 }
 0x3cc   : > { %1127 = shalt.err (!%p1124_p8)
}
 0x3cd   : > { %943 = dma.vmem_to_hbm [thread:$0]  (%p1311_p10), %s1432_s26, 128, %s1430_s21, %s681_s15  }
 0x3ce PF: > { %s708_s18 = sand.u32 1, %s1166_s12   ;;  %p1500_p12 = scmp.ne.s32.totalorder %s1490_s23, 0 }
 0x3cf   : > { %p1501_p11 = scmp.ge.s32.totalorder %s1186_s17, 2  ;;  %s709_s29 = scalar_lea.sflag [#allocation6], %s708_s18 }
 0x3d1   : > { %p954_p0 = pnand %p1501_p11, %p1500_p12 }
 0x3d3   : > { %1161 = dma.done.wait (!%p954_p0), %s709_s29, 128  }
 0x3d4   : > { %1163 = vsyncadd (!%p954_p0), %s709_s29, 4294967168  ;;  %s20_s17 = sadd.s32 1, %s1186_s17   ;;  %s1502_s12 = smov %s1170_s13 }
 0x3d5   : > { %p17_p5 = scmp.ge.s32.totalorder %s20_s17, 4   ;;  %s1503_s13 = smov %s1174_s14 }
 0x3d6   : > { %s1504_s14 = smov %s1320_s5  ;;  %s1505_s15 = smov %s1182_s16 }
 0x3d7   : > { %s1506_s16 = smov %s1508_s28  ;;  %19 = sbr.rel (!%p17_p5) target bundleno = 7 (0x7), region = 86 }
 0x3de   :  { %714 = vsyncpa [#allocation5], 1 }
 0x3df   :  { %716 = vsyncpa [#allocation5 + $0x1], 1 }
 0x3e0   :  { %717 = vsyncpa [#allocation8], 1 }
 0x3e1   :  { %718 = vsyncpa [#allocation6], 1 }
 0x3e2   :  { %720 = vsyncpa [#allocation6 + $0x1], 1 }

</bundles_post_ra>
